<compile_context>
chip_gen: v6e
topology: v6e:2x2x1
jax: 0.10.0
libtpu: 0.0.40
codegen_flags: <defaults>
</compile_context>

<pallas_src>
import functools

import numpy as np
import jax
import jax.numpy as jnp
from jax import lax
from jax.experimental import pallas as pl
from jax.experimental.pallas import tpu as pltpu


# ----------------------------------------------------------------------------
# Synthetic hierarchy (deterministic balanced tree) -> the constant tensors the
# torch module builds at __init__ time.
# ----------------------------------------------------------------------------
def build_hierarchy(depth=4, branching=2, alpha=0.3):
    leaves, internal = [], []

    def rec(pos):
        if 0 < len(pos) < depth:
            internal.append(pos)
        if len(pos) == depth:
            leaves.append(pos)
            return
        for c in range(branching):
            rec(pos + (c,))

    rec(())

    # class ordering: leaves first (so `target` indexes them directly), then
    # the internal non-root nodes.
    nodes = leaves + internal
    index = {p: i for i, p in enumerate(nodes)}
    L, N = len(leaves), len(nodes)

    # sibling groups = children of every internal node (root included)
    parents = [()] + internal
    groups = [np.array([index[par + (c,)] for c in range(branching)], dtype=np.int32)
              for par in parents]

    # sibling_mat[n, s] = 1 iff nodes n and s share a parent (n included)
    sibling_mat = np.zeros((N, N), np.float32)
    for g in groups:
        sibling_mat[np.ix_(g, g)] = 1.0

    # path_onehot[leaf, n] = 1 iff node n lies on the root->leaf path (root excl.)
    path_onehot = np.zeros((L, N), np.float32)
    for i, leaf in enumerate(leaves):
        for k in range(1, depth + 1):
            path_onehot[i, index[leaf[:k]]] = 1.0

    # deterministic per-depth exponential weights (stand-in for the weights Tree)
    weights = np.array([np.exp(-alpha * (len(p) - 1)) for p in nodes], np.float32)

    return sibling_mat, path_onehot, weights, groups


# ----------------------------------------------------------------------------
# Pallas kernel: one grid step per batch tile.
# ----------------------------------------------------------------------------
def _yolo_cascade_kernel(x_ref, tgt_ref, sib_ref, pathw_ref, out_ref, acc_ref, *,
                         num_leaves, tile_b, batch):
    t = pl.program_id(0)

    @pl.when(t == 0)
    def _init():
        acc_ref[...] = jnp.zeros_like(acc_ref)

    x = x_ref[...].astype(jnp.float32)                     # (TB, N) logits
    # Row-max stabilisation only; the max cancels exactly in
    # x - log(sum_{siblings} exp(x)), so no softmax divide is needed.
    m = jnp.max(x, axis=-1, keepdims=True)
    xc = x - m
    e = jnp.exp(xc)                                        # (TB, N)

    # Per-node sibling-group logsumexp denominator via one MXU matmul.
    den = jnp.dot(e, sib_ref[...], preferred_element_type=jnp.float32)   # (TB, N)
    log_cond = xc - jnp.log(den)                           # log conditional probs

    # Gather each sample's weighted root->leaf path mask with a one-hot matmul
    # (target gather stays in-kernel, no per-sample DMAs).
    tgt = tgt_ref[...]                                     # (TB, 1) int32
    leaf_iota = lax.broadcasted_iota(jnp.int32, (tile_b, num_leaves), 1)
    onehot_t = (leaf_iota == tgt).astype(jnp.float32)      # (TB, L)
    sel = jnp.dot(onehot_t, pathw_ref[...], preferred_element_type=jnp.float32)  # (TB, N)

    # Mask batch-padding rows (only possible in the last tile).
    row = lax.broadcasted_iota(jnp.int32, (tile_b, 1), 0) + t * tile_b
    valid = (row < batch).astype(jnp.float32)              # (TB, 1)

    per_sample = -jnp.sum(sel * log_cond, axis=-1, keepdims=True)        # (TB, 1)
    acc_ref[...] += jnp.sum(valid * per_sample, keepdims=True)           # (1, 1)

    # Output block is resident (constant index_map); writing the running mean
    # each step is a 1x1 VMEM store, HBM writeback only happens at grid end.
    out_ref[...] = acc_ref[...] * (1.0 / batch)


def yolo_loss(logits, target, sibling_mat, path_weighted, *, max_tile_b=128):
    B, N = logits.shape
    L = path_weighted.shape[0]

    TB = B if B <= max_tile_b else max_tile_b
    B_pad = ((B + TB - 1) // TB) * TB
    if B_pad != B:
        logits = jnp.pad(logits, ((0, B_pad - B), (0, 0)))
        target = jnp.pad(target, (0, B_pad - B))
    tgt2 = target.astype(jnp.int32).reshape(B_pad, 1)
    num_tiles = B_pad // TB

    kernel = functools.partial(_yolo_cascade_kernel,
                               num_leaves=L, tile_b=TB, batch=B)

    grid_spec = pltpu.PrefetchScalarGridSpec(
        num_scalar_prefetch=0,
        grid=(num_tiles,),
        in_specs=[
            pl.BlockSpec((TB, N), lambda t: (t, 0)),       # logits batch tile
            pl.BlockSpec((TB, 1), lambda t: (t, 0)),       # targets batch tile
            pl.BlockSpec((N, N), lambda t: (0, 0)),        # sibling matrix (VMEM-resident)
            pl.BlockSpec((L, N), lambda t: (0, 0)),        # weights*path mask (VMEM-resident)
        ],
        out_specs=pl.BlockSpec((1, 1), lambda t: (0, 0)),  # scalar loss
        scratch_shapes=[pltpu.VMEM((1, 1), jnp.float32)],  # running-sum accumulator
    )

    out = pl.pallas_call(
        kernel,
        out_shape=jax.ShapeDtypeStruct((1, 1), jnp.float32),
        grid_spec=grid_spec,
        compiler_params=pltpu.CompilerParams(
            # The batch-tile axis carries the scalar accumulator -> "arbitrary".
            # (For v7x / very large B: emit two partial sums over a leading
            #  "parallel" axis to use both TensorCores, and sum in the wrapper.)
            dimension_semantics=("arbitrary",),
        ),
    )(logits, tgt2, sibling_mat, path_weighted)
    return out[0, 0]


# ----------------------------------------------------------------------------
# Pure-JAX reference mirroring SoftmaxCascade.cross_entropy (for verification):
# per-sibling-group log-softmax, target-path selection, per-node weights, batch mean.
# ----------------------------------------------------------------------------
def reference_loss(logits, target, sibling_groups, path_onehot, weights):
    log_cond = jnp.zeros_like(logits)
    for g in sibling_groups:
        log_cond = log_cond.at[:, g].set(jax.nn.log_softmax(logits[:, g], axis=1))
    sel = path_onehot[target]                              # (B, N)
    return -jnp.sum(sel * weights[None, :] * log_cond) / logits.shape[0]


if __name__ == "__main__":
    DEPTH, BRANCHING, B = 4, 2, 8          # 16 leaves, 30 non-root nodes
    sibling_np, path_onehot_np, weights_np, groups = build_hierarchy(DEPTH, BRANCHING)
    L, N = path_onehot_np.shape

    key = jax.random.PRNGKey(0)
    k1, k2 = jax.random.split(key)
    logits = jax.random.normal(k1, (B, N), dtype=jnp.float32)
    target = jax.random.randint(k2, (B,), 0, L, dtype=jnp.int32)

    sibling_mat = jnp.asarray(sibling_np)
    path_onehot = jnp.asarray(path_onehot_np)
    weights = jnp.asarray(weights_np)
    # init-time constant fold: weighted path-selection matrix (module buffers)
    path_weighted = jnp.asarray(path_onehot_np * weights_np[None, :])

    loss = yolo_loss(logits, target, sibling_mat, path_weighted)
    loss = jax.block_until_ready(loss)

    ref = jax.block_until_ready(
        reference_loss(logits, target, groups, path_onehot, weights)
    )
    np.testing.assert_allclose(np.asarray(loss), np.asarray(ref), rtol=1e-5, atol=1e-5)

    print("KERNEL_OK")
</pallas_src>

<mosaic_0001>
module attributes {stable_mosaic.version = 11 : i64} {
  func.func @_yolo_cascade_kernel(%arg0: i32, %arg1: memref<8x30xf32, #tpu.memory_space<vmem>>, %arg2: memref<8x1xi32, #tpu.memory_space<vmem>>, %arg3: memref<30x30xf32, #tpu.memory_space<vmem>>, %arg4: memref<16x30xf32, #tpu.memory_space<vmem>>, %arg5: memref<1x1xf32, #tpu.memory_space<vmem>>, %arg6: memref<1x1xf32, #tpu.memory_space<vmem>>) attributes {dimension_semantics = [#tpu.dimension_semantics<arbitrary>], iteration_bounds = array<i64: 1>, scalar_prefetch = 0 : i64, scratch_operands = 1 : i64, tpu.core_type = #tpu.core_type<tc>, window_params = [{transform_indices = @transform_0, window_bounds = array<i64: 8, 30>}, {transform_indices = @transform_1, window_bounds = array<i64: 8, 1>}, {pipeline_mode = #tpu.pipeline_mode<synchronous>, transform_indices = @transform_2, window_bounds = array<i64: 30, 30>}, {pipeline_mode = #tpu.pipeline_mode<synchronous>, transform_indices = @transform_3, window_bounds = array<i64: 16, 30>}, {pipeline_mode = #tpu.pipeline_mode<synchronous>, transform_indices = @transform_4, window_bounds = array<i64: 1, 1>}]} {
    %c0_i32 = arith.constant 0 : i32
    %0 = arith.cmpi eq, %arg0, %c0_i32 : i32
    %1 = arith.extui %0 : i1 to i32
    %c0_i32_0 = arith.constant 0 : i32
    %2 = arith.cmpi ne, %1, %c0_i32_0 : i32
    scf.if %2 {
      %cst_23 = arith.constant 0.000000e+00 : f32
      %47 = vector.broadcast %cst_23 : f32 to vector<1x1xf32>
      %c0_24 = arith.constant 0 : index
      %c0_25 = arith.constant 0 : index
      %48 = vector.load %arg6[%c0_24, %c0_25] : memref<1x1xf32, #tpu.memory_space<vmem>>, vector<1x1xf32>
      tpu.vector_store %arg6[%c0_24, %c0_25], %47 {strides = array<i32>} : memref<1x1xf32, #tpu.memory_space<vmem>>, vector<1x1xf32>,
    } else {
    }
    %c0 = arith.constant 0 : index
    %c0_1 = arith.constant 0 : index
    %3 = vector.load %arg1[%c0, %c0_1] : memref<8x30xf32, #tpu.memory_space<vmem>>, vector<8x30xf32>
    %cst = arith.constant dense<0xFF800000> : vector<8xf32>
    %4 = vector.multi_reduction <maximumf>, %3, %cst [1] : vector<8x30xf32> to vector<8xf32>
    %5 = vector.shape_cast %4 : vector<8xf32> to vector<8x1xf32>
    %6 = vector.broadcast %5 : vector<8x1xf32> to vector<8x30xf32>
    %7 = arith.subf %3, %6 : vector<8x30xf32>
    %8 = math.exp %7 : vector<8x30xf32>
    %c0_2 = arith.constant 0 : index
    %c0_3 = arith.constant 0 : index
    %9 = vector.load %arg3[%c0_2, %c0_3] : memref<30x30xf32, #tpu.memory_space<vmem>>, vector<30x30xf32>
    %cst_4 = arith.constant dense<0.000000e+00> : vector<8x30xf32>
    %10 = tpu.matmul %8, %9, %cst_4 {dimension_numbers = #tpu.dot_dimension_numbers<[1], [0], [0], [1], [0, 0, 1, 1], [], []>} : vector<8x30xf32>, vector<30x30xf32>, vector<8x30xf32> -> vector<8x30xf32>
    %11 = math.log %10 : vector<8x30xf32>
    %12 = arith.subf %7, %11 : vector<8x30xf32>
    %c0_5 = arith.constant 0 : index
    %c0_6 = arith.constant 0 : index
    %13 = vector.load %arg2[%c0_5, %c0_6] : memref<8x1xi32, #tpu.memory_space<vmem>>, vector<8x1xi32>
    %14 = tpu.iota {dimensions = array<i32: 1>} : vector<8x16xi32>
    %15 = vector.broadcast %13 : vector<8x1xi32> to vector<8x16xi32>
    %16 = arith.cmpi eq, %14, %15 : vector<8x16xi32>
    %17 = arith.extui %16 : vector<8x16xi1> to vector<8x16xi32>
    %18 = arith.sitofp %17 : vector<8x16xi32> to vector<8x16xf32>
    %c0_7 = arith.constant 0 : index
    %c0_8 = arith.constant 0 : index
    %19 = vector.load %arg4[%c0_7, %c0_8] : memref<16x30xf32, #tpu.memory_space<vmem>>, vector<16x30xf32>
    %cst_9 = arith.constant dense<0.000000e+00> : vector<8x30xf32>
    %20 = tpu.matmul %18, %19, %cst_9 {dimension_numbers = #tpu.dot_dimension_numbers<[1], [0], [0], [1], [0, 0, 1, 1], [], []>} : vector<8x16xf32>, vector<16x30xf32>, vector<8x30xf32> -> vector<8x30xf32>
    %21 = tpu.iota {dimensions = array<i32: 0>} : vector<8x1xi32>
    %c8_i32 = arith.constant 8 : i32
    %22 = arith.muli %arg0, %c8_i32 : i32
    %23 = vector.broadcast %22 : i32 to vector<8x1xi32>
    %24 = arith.addi %21, %23 : vector<8x1xi32>
    %c8_i32_10 = arith.constant 8 : i32
    %25 = vector.broadcast %c8_i32_10 : i32 to vector<8x1xi32>
    %26 = arith.cmpi slt, %24, %25 : vector<8x1xi32>
    %27 = arith.extui %26 : vector<8x1xi1> to vector<8x1xi32>
    %28 = arith.sitofp %27 : vector<8x1xi32> to vector<8x1xf32>
    %29 = arith.mulf %20, %12 : vector<8x30xf32>
    %cst_11 = arith.constant dense<0.000000e+00> : vector<8xf32>
    %30 = vector.multi_reduction <add>, %29, %cst_11 [1] : vector<8x30xf32> to vector<8xf32>
    %31 = vector.shape_cast %30 : vector<8xf32> to vector<8x1xf32>
    %cst_12 = arith.constant 0.000000e+00 : f32
    %32 = vector.broadcast %cst_12 : f32 to vector<8x1xf32>
    %33 = arith.subf %32, %31 : vector<8x1xf32>
    %c0_13 = arith.constant 0 : index
    %c0_14 = arith.constant 0 : index
    %34 = vector.load %arg6[%c0_13, %c0_14] : memref<1x1xf32, #tpu.memory_space<vmem>>, vector<1x1xf32>
    %35 = arith.mulf %28, %33 : vector<8x1xf32>
    %36 = vector.shape_cast %35 : vector<8x1xf32> to vector<1x8x1xf32>
    %cst_15 = arith.constant dense<0.000000e+00> : vector<1xf32>
    %37 = vector.multi_reduction <add>, %36, %cst_15 [1, 2] : vector<1x8x1xf32> to vector<1xf32>
    %38 = vector.shape_cast %37 : vector<1xf32> to vector<1x1x1xf32>
    %39 = vector.extract %38[0, 0, 0] : f32 from vector<1x1x1xf32>
    %40 = vector.broadcast %39 : f32 to vector<1x1xf32>
    %41 = arith.addf %34, %40 : vector<1x1xf32>
    %c0_16 = arith.constant 0 : index
    %c0_17 = arith.constant 0 : index
    %42 = vector.load %arg6[%c0_16, %c0_17] : memref<1x1xf32, #tpu.memory_space<vmem>>, vector<1x1xf32>
    tpu.vector_store %arg6[%c0_16, %c0_17], %41 {strides = array<i32>} : memref<1x1xf32, #tpu.memory_space<vmem>>, vector<1x1xf32>,
    %c0_18 = arith.constant 0 : index
    %c0_19 = arith.constant 0 : index
    %43 = vector.load %arg6[%c0_18, %c0_19] : memref<1x1xf32, #tpu.memory_space<vmem>>, vector<1x1xf32>
    %cst_20 = arith.constant 1.250000e-01 : f32
    %44 = vector.broadcast %cst_20 : f32 to vector<1x1xf32>
    %45 = arith.mulf %43, %44 : vector<1x1xf32>
    %c0_21 = arith.constant 0 : index
    %c0_22 = arith.constant 0 : index
    %46 = vector.load %arg5[%c0_21, %c0_22] : memref<1x1xf32, #tpu.memory_space<vmem>>, vector<1x1xf32>
    tpu.vector_store %arg5[%c0_21, %c0_22], %45 {strides = array<i32>} : memref<1x1xf32, #tpu.memory_space<vmem>>, vector<1x1xf32>,
    return
  }
  func.func @transform_0(%arg0: i32) -> (i32, i32) {
    %c0_i32 = arith.constant 0 : i32
    %c0_i32_0 = arith.constant 0 : i32
    return %arg0, %c0_i32 : i32, i32
  }
  func.func @transform_1(%arg0: i32) -> (i32, i32) {
    %c0_i32 = arith.constant 0 : i32
    %c0_i32_0 = arith.constant 0 : i32
    return %arg0, %c0_i32 : i32, i32
  }
  func.func @transform_2(%arg0: i32) -> (i32, i32) {
    %c0_i32 = arith.constant 0 : i32
    %c0_i32_0 = arith.constant 0 : i32
    %c0_i32_1 = arith.constant 0 : i32
    return %c0_i32, %c0_i32_0 : i32, i32
  }
  func.func @transform_3(%arg0: i32) -> (i32, i32) {
    %c0_i32 = arith.constant 0 : i32
    %c0_i32_0 = arith.constant 0 : i32
    %c0_i32_1 = arith.constant 0 : i32
    return %c0_i32, %c0_i32_0 : i32, i32
  }
  func.func @transform_4(%arg0: i32) -> (i32, i32) {
    %c0_i32 = arith.constant 0 : i32
    %c0_i32_0 = arith.constant 0 : i32
    %c0_i32_1 = arith.constant 0 : i32
    return %c0_i32, %c0_i32_0 : i32, i32
  }
}

</mosaic_0001>

<bundles_post_ra>
// kernel: tpu_custom_call.1
= control target key start
LH: loop header
LB: loop body
LE: loop exit
PB: predicated region body
PF: predicated region fallthrough
CT: control target
= control target key end

     0   :  { %9 = vsyncpa [#allocation4], 0  ;;  %s443_s0 = inlined_call_operand.vmem [shape: f32[8,30], index: 0, kind: input, shape index: {}]   ;;  %s444_s1 = inlined_call_operand.vmem [shape: s32[8,1], index: 1, kind: input, shape index: {}]   ;;  %s445_s2 = inlined_call_operand.hbm [shape: f32[30,30], index: 2, kind: input, shape index: {}]   ;;  %s446_s3 = inlined_call_operand.hbm [shape: f32[16,30], index: 3, kind: input, shape index: {}]   ;;  %s447_s4 = inlined_call_operand.hbm [shape: f32[1,1], index: 4, kind: output, shape index: {}]  }
   0x1   :  { %10 = vsyncpa [#allocation7], 0 }
   0x2   :  { %11 = vsyncpa [#allocation5], 0  ;;  %s389_s15 = smov [#allocation3]  }
   0x3   :  { %s21_s16 = sshll.u32 %s389_s15, 4  ;;  %s22_s16 = int_to_ptr.vmem [resolvable:$true] %s21_s16 }
   0x4   :  { %s331_s17 = scalar_lea.vmem %s22_s16, 512  ;;  %p336_p1 = scmp.lt.s32.totalorder %s22_s16, %s22_s16 }
   0x5   :  { %p332_p0 = scmp.ne.s32.totalorder %s22_s16, %s331_s17  ;;  %p337_p2 = scmp.lt.s32.totalorder %s331_s17, %s331_s17 }
   0x7   :  { %p338_p3 = por %p337_p2, %p336_p1 }
   0x9   :  { %p339_p4 = pnand %p338_p3, %p332_p0 }
   0xb   :  { %342 = shalt.err (!%p339_p4)
}
   0xc   :  { %s390_s18 = smov 128   ;;  %s391_s19 = smov 8  }
   0xd   :  { %27 = dma.hbm_to_vmem [thread:$0]  %s445_s2, 512, %s22_s16, [#allocation4], %s390_s18, %s390_s18, %s391_s19  }
   0xe   :  { %s392_s22 = smov [#allocation6]  }
   0xf   :  { %s33_s23 = sshll.u32 %s392_s22, 4  ;;  %s34_s23 = int_to_ptr.vmem [resolvable:$true] %s33_s23 }
  0x10   :  { %s351_s24 = scalar_lea.vmem %s34_s23, 256  ;;  %p356_p6 = scmp.lt.s32.totalorder %s34_s23, %s34_s23 }
  0x11   :  { %p352_p5 = scmp.ne.s32.totalorder %s34_s23, %s351_s24  ;;  %p357_p7 = scmp.lt.s32.totalorder %s351_s24, %s351_s24 }
  0x13   :  { %p358_p8 = por %p357_p7, %p356_p6 }
  0x15   :  { %p359_p9 = pnand %p358_p8, %p352_p5 }
  0x17   :  { %362 = shalt.err (!%p359_p9)
}
  0x18   :  { %39 = dma.hbm_to_vmem [thread:$0]  %s446_s3, 256, %s34_s23, [#allocation7], %s390_s18, %s390_s18, %s391_s19  }
  0x19   :  { %383 = dma.done.wait [#allocation4], 512  }
  0x1a   :  { %384 = vsyncadd [#allocation4], 4294966784 }
  0x1b   :  { %385 = dma.done.wait [#allocation7], 256  }
  0x1c   :  { %386 = vsyncadd [#allocation7], 4294967040  ;;  %v393_v0 = vmov 0   ;;  %vm53_vm0 = vcmask 244736   ;;  %v52_v1 = vld [vmem:[%s443_s0] sm:$0xff]  ;;  %vm67_vm1 = vcmask 1045504   ;;  %v145_v13 = vlaneseq }
  0x1d   :  { %318 = vset.pattern.permute.xlu0 %v393_v0  ;;  %v54_v2 = vsel %vm53_vm0, %v52_v1, -inf  ;;  %v63_v3 = vld [vmem:[#allocation3 + $0x18] sm:$0x3f]  ;;  %v394_v4 = vmov 0.0   ;;  %v62_v5 = vld [vmem:[#allocation3 + $0x10] sm:$0xff]  ;;  %vm395_vm2 = vmmov 0  }
  0x1e   :  { %55 = vmax.xlane.f32.xlu0 %v54_v2  ;;  %290 = vmatprep.subr.mxu0 %v394_v4  ;;  %v61_v6 = vld [vmem:[#allocation3 + $0x8] sm:$0xff]  ;;  %v144_v7 = vld [vmem:[%s444_s1] sm:$0xff]  ;;  %v146_v15 = vand.u32 127, %v145_v13  ;;  %vm155_vm3 = vcmask 130048   ;;  %vm244_vm5 = vcmask 7168   ;;  %vm50_vm6 = vcmask 0  }
  0x1f   :  { %301 = vmatprep.subr.mxu1 %v394_v4  ;;  %291 = vmatpush3.msk.msra.mxu0 %vm67_vm1, %v63_v3  ;;  %v60_v8 = vld [vmem:[#allocation3] sm:$0xff]  ;;  %v154_v9 = vld [vmem:[#allocation6 + $0x8] sm:$0xff]  ;;  %51 = vst.msk [vmem:[#allocation2] sm:$0x1] %vm50_vm6, %v394_v4  ;;  %s396_s1 = smov [#allocation8]  }
  0x20   :  { %298 = vmatprep.mubr.msk.f32.mxu0 %vm395_vm2, %v394_v4  ;;  %292 = vmatprep.subr.mxu0 %v394_v4  ;;  %v153_v10 = vld [vmem:[#allocation6] sm:$0xff]  ;;  %s268_s29 = sshll.u32 %s396_s1, 4  ;;  %s269_s29 = int_to_ptr.vmem [resolvable:$true] %s268_s29 }
  0x21   :  { %305 = vmatprep.mubr.msk.f32.mxu1 %vm395_vm2, %v394_v4  ;;  %293 = vmatpush3.msra.mxu0 %v62_v5  ;;  %s363_s30 = scalar_lea.vmem %s269_s29, 16  ;;  %s367_s5 = scalar_lea.vmem %s269_s29, 32 }
  0x22   :  { %294 = vmatprep.subr.mxu0 %v394_v4  ;;  %302 = vmatpush3.msra.mxu1 %v154_v9  ;;  %p364_p10 = scmp.ne.s32.totalorder %s269_s29, %s363_s30  ;;  %p368_p11 = scmp.lt.s32.totalorder %s269_s29, %s269_s29 }
  0x23   :  { %295 = vmatpush3.msra.mxu0 %v61_v6  ;;  %303 = vmatprep.subr.mxu1 %v394_v4  ;;  %p369_p12 = scmp.lt.s32.totalorder %s367_s5, %s363_s30 }
  0x24   :  { %296 = vmatprep.subr.mxu0 %v394_v4  ;;  %304 = vmatpush3.msra.mxu1 %v153_v10 }
  0x25   :  { %297 = vmatpush3.msra.mxu0 %v60_v8  ;;  %p370_p13 = por %p369_p12, %p368_p11 }
  0x26   :  { %v242_v38 = vld [vmem:[#allocation2] sm:$0x1] }
  0x27   :  { %p371_p0 = pnand %p370_p13, %p364_p10 }
  0x34   :  { %148 = vperm.xlu0 %318, %v144_v7  }
  0xa7   :  { %v56_v11 = vpop.xlane.xlu0 %55 }
  0xa8   :  { %v57_v12 = vsub.f32 %v52_v1, %v56_v11 }
  0xaa   :  { %v58_v14 = vmul.f32 1.442695, %v57_v12 }
  0xac   :  { %319 = vpow2.f32 %v58_v14 }
  0xaf   :  { %v149_v16 = vpop.permute.xlu0 %148 }
  0xb0   :  { %vm150_vm4 = vcmp.eq.s32.totalorder %v146_v15, %v149_v16 }
  0xb1   :  { %v280_v17 = vsel %vm150_vm4, 1.0, %v394_v4 }
  0xb2   :  { %306 = vmatmul.mubr.msk.f32.vlgmr.msra.gmra.mxu1 %vm155_vm3, %v280_v17 }
  0xb9   :  { %v320_v18 = vpop.eup %319 }
  0xba   :  { %299 = vmatmul.mubr.msk.f32.vlgmr.msra.gmra.mxu0 %vm53_vm0, %v320_v18 }
 0x172   :  { %v225_v19 = vpop.f32.mrf.mxu1 }
 0x174   :  { %v307_v20 = vpop.f32.mrf.mxu1 }
 0x17a   :  { %v137_v21 = vpop.f32.mrf.mxu0 }
 0x17b   :  { %321 = vlog2.f32 %v137_v21 }
 0x17c   :  { %v300_v22 = vpop.f32.mrf.mxu0 }
 0x188   :  { %v322_v23 = vpop.eup %321 }
 0x189   :  { %v142_v24 = vmul.f32 0.6931472, %v322_v23 }
 0x18b   :  { %v143_v25 = vsub.f32 %v57_v12, %v142_v24 }
 0x18d   :  { %v237_v26 = vmul.f32 %v225_v19, %v143_v25 }
 0x18f   :  { %v238_v27 = vsel %vm53_vm0, %v237_v26, 0.0 }
 0x190   :  { %239 = vadd.xlane.f32.xlu1 %v238_v27 }
 0x219   :  { %v240_v28 = vpop.xlane.xlu1 %239 }
 0x21a   :  { %v241_v29 = vsub.f32 0.0, %v240_v28 }
 0x21c   :  { %v245_v30 = vsel %vm244_vm5, %v241_v29, 0.0 }
 0x21d   :  { %246 = vadd.xlane.f32.xlu1 %v245_v30 }
 0x2a6   :  { %v247_v31 = vpop.xlane.xlu1 %246 }
 0x2a7   :  { %v248_v32 = vrot.slane %v247_v31, 4 }
 0x2a9   :  { %v249_v33 = vadd.f32 %v248_v32, %v247_v31 }
 0x2ab   :  { %v250_v34 = vrot.slane %v249_v33, 2 }
 0x2ad   :  { %v251_v35 = vadd.f32 %v250_v34, %v249_v33 }
 0x2af   :  { %v252_v36 = vrot.slane %v251_v35, 1 }
 0x2b1   :  { %v253_v37 = vadd.f32 %v252_v36, %v251_v35 }
 0x2b3   :  { %308 = vpush %v253_v37 }
 0x2e4   :  { %s309_s0 = spop %308 }
 0x2e5   :  { %v255_v39 = vstv %s309_s0 }
 0x2e6   :  { %v256_v40 = vadd.f32 %v255_v39, %v242_v38 }
 0x2e8   :  { %258 = vst.msk [vmem:[#allocation2] sm:$0x1] %vm50_vm6, %v256_v40 }
 0x2ef   :  { %v259_v41 = vld [vmem:[#allocation2] sm:$0x1] }
 0x2f0   :  { %v260_v42 = vmul.f32 0.125, %v259_v41 }
 0x2f2   :  { %261 = vst.msk [vmem:[#allocation8] sm:$0x1] %vm50_vm6, %v260_v42 }
 0x2f3   :  { %374 = shalt.err (!%p371_p0)
}
 0x2f4   :  { %271 = dma.vmem_to_hbm [thread:$0]  %s269_s29, 16, %s447_s4, [#allocation5]  }
 0x2f5   :  { %387 = dma.done.wait [#allocation5], 16  }
 0x2f6   :  { %388 = vsyncadd [#allocation5], 4294967280 }
 0x2f7   :  { %275 = vsyncpa [#allocation4], 1 }
 0x2f8   :  { %276 = vsyncpa [#allocation7], 1 }
 0x2f9   :  { %277 = vsyncpa [#allocation5], 1 }

</bundles_post_ra>
